<compile_context>
chip_gen: v5e
topology: v5e:2x2
jax: 0.10.0
libtpu: 0.0.40
codegen_flags: <defaults>
</compile_context>

<pallas_src>
import jax
import jax.numpy as jnp
from jax.experimental import pallas as pl
from jax.experimental.pallas import tpu as pltpu

EPS = 1e-5


def _patch_embed_kernel(p_ref, w_ref, b_ref, g_ref, beta_ref, o_ref):
    # p_ref: (TM, K) bf16 patches, w_ref: (K, N) bf16 weight,
    # b/g/beta: (1, N) f32, o_ref: (TM, N) f32.
    y = jnp.dot(p_ref[...], w_ref[...], preferred_element_type=jnp.float32)
    y = y + b_ref[...]
    # One-pass LayerNorm statistics: var = E[y^2] - mean^2 (clamped for safety).
    mean = jnp.mean(y, axis=-1, keepdims=True)
    m2 = jnp.mean(y * y, axis=-1, keepdims=True)
    var = jnp.maximum(m2 - mean * mean, 0.0)
    yn = (y - mean) * jax.lax.rsqrt(var + EPS)          # rsqrt -> EUP slot
    o_ref[...] = (yn * g_ref[...] + beta_ref[...]).astype(o_ref.dtype)


def _round_up(x, m):
    return (x + m - 1) // m * m


def _im2col_nhwc(x, kh, kw, stride, ph, pw):
    """x: (B, C, H, W) -> patches (B*Ho*Wo, kh*kw*C); K order = (ki, kj, c)."""
    B, C, H, W = x.shape
    x_nhwc = jnp.transpose(x, (0, 2, 3, 1))                      # (B, H, W, C)
    xp = jnp.pad(x_nhwc, ((0, 0), (ph, ph), (pw, pw), (0, 0)))
    Ho = (H + 2 * ph - kh) // stride + 1
    Wo = (W + 2 * pw - kw) // stride + 1
    slabs = []
    for ki in range(kh):
        for kj in range(kw):
            slabs.append(xp[:, ki:ki + stride * Ho:stride,
                            kj:kj + stride * Wo:stride, :])      # (B, Ho, Wo, C)
    pats = jnp.stack(slabs, axis=3)                              # (B, Ho, Wo, kh*kw, C)
    return pats.reshape(B * Ho * Wo, kh * kw * C), Ho, Wo


def patch_embed_forward(x, conv_w, conv_b, ln_gamma, ln_beta, stride, padding,
                        tile_m=2048):
    """x: (B, C, H, W) NCHW. Returns ((B, Ho*Wo, embed_dim), (Ho, Wo))."""
    B = x.shape[0]
    embed_dim, in_chans, kh, kw = conv_w.shape
    ph, pw = padding

    patches, Ho, Wo = _im2col_nhwc(x, kh, kw, stride, ph, pw)    # (M, K) f32
    M, K = patches.shape
    N = embed_dim

    # Tile M; pad so every grid step sees a full (TM, K) tile (padded rows are
    # zeros -> finite LayerNorm output, sliced off afterwards).
    TM = min(tile_m, _round_up(M, 128))                          # multiple of 128
    M_pad = _round_up(M, TM)
    if M_pad != M:
        patches = jnp.pad(patches, ((0, M_pad - M), (0, 0)))

    # bf16 matmul operands, f32 accumulation / bias / LayerNorm.
    patches_bf16 = patches.astype(jnp.bfloat16)
    # Weight flattened to (kh*kw*C, N) to match the (ki, kj, c) K order.
    w2d = jnp.transpose(conv_w, (2, 3, 1, 0)).reshape(K, N).astype(jnp.bfloat16)
    b2d = conv_b.reshape(1, N).astype(jnp.float32)
    g2d = ln_gamma.reshape(1, N).astype(jnp.float32)
    be2d = ln_beta.reshape(1, N).astype(jnp.float32)

    grid = (M_pad // TM,)
    out = pl.pallas_call(
        _patch_embed_kernel,
        out_shape=jax.ShapeDtypeStruct((M_pad, N), jnp.float32),
        grid=grid,
        in_specs=[
            pl.BlockSpec((TM, K), lambda i: (i, 0)),   # streamed patch tiles
            pl.BlockSpec((K, N), lambda i: (0, 0)),    # resident weight
            pl.BlockSpec((1, N), lambda i: (0, 0)),    # resident bias
            pl.BlockSpec((1, N), lambda i: (0, 0)),    # resident gamma
            pl.BlockSpec((1, N), lambda i: (0, 0)),    # resident beta
        ],
        out_specs=pl.BlockSpec((TM, N), lambda i: (i, 0)),
        compiler_params=pltpu.CompilerParams(
            dimension_semantics=("parallel",),          # megacore split on v7x
            vmem_limit_bytes=48 * 1024 * 1024,          # above 32 MiB default, headroom on v7x
        ),
    )(patches_bf16, w2d, b2d, g2d, be2d)

    out = out[:M]
    return out.reshape(B, Ho * Wo, N), (Ho, Wo)


def _reference(x, conv_w, conv_b, ln_gamma, ln_beta, stride, padding):
    # Plain-JAX f32 reference for sanity check.
    y = jax.lax.conv_general_dilated(
        x, conv_w, window_strides=(stride, stride),
        padding=[padding, padding],
        dimension_numbers=("NCHW", "OIHW", "NCHW"),
    ) + conv_b[None, :, None, None]
    B, C, Ho, Wo = y.shape
    y = y.reshape(B, C, Ho * Wo).transpose(0, 2, 1)              # (B, L, C)
    mean = jnp.mean(y, axis=-1, keepdims=True)
    var = jnp.mean((y - mean) ** 2, axis=-1, keepdims=True)
    yn = (y - mean) * jax.lax.rsqrt(var + EPS)
    return yn * ln_gamma + ln_beta, (Ho, Wo)


if __name__ == "__main__":
    # Small config consistent with PatchEmbed: patch_size=7 -> padding=(3, 3).
    B, in_chans, img = 2, 4, 16
    patch_size, stride, embed_dim = 7, 4, 32
    padding = (patch_size // 2, patch_size // 2)

    key = jax.random.PRNGKey(0)
    kx, kw, kb = jax.random.split(key, 3)
    x = jax.random.normal(kx, (B, in_chans, img, img), dtype=jnp.float32)
    conv_w = jax.random.normal(
        kw, (embed_dim, in_chans, patch_size, patch_size), dtype=jnp.float32) * 0.02
    conv_b = jax.random.normal(kb, (embed_dim,), dtype=jnp.float32) * 0.02
    ln_gamma = jnp.ones((embed_dim,), dtype=jnp.float32)   # PyTorch LayerNorm default
    ln_beta = jnp.zeros((embed_dim,), dtype=jnp.float32)

    out, (Ho, Wo) = patch_embed_forward(
        x, conv_w, conv_b, ln_gamma, ln_beta, stride, padding)
    out = jax.block_until_ready(out)

    ref, _ = _reference(x, conv_w, conv_b, ln_gamma, ln_beta, stride, padding)
    assert out.shape == (B, Ho * Wo, embed_dim)
    assert Ho == img // stride and Wo == img // stride
    # Tolerance loosened because the matmul operands are bf16 (f32 accumulation).
    assert jnp.allclose(out, ref, atol=5e-2, rtol=5e-2), (
        float(jnp.max(jnp.abs(out - ref))))

    print("KERNEL_OK")
</pallas_src>

<mosaic_0001>
module attributes {stable_mosaic.version = 11 : i64} {
  func.func @_patch_embed_kernel(%arg0: i32, %arg1: memref<128x196xbf16, #tpu.memory_space<vmem>>, %arg2: memref<196x32xbf16, #tpu.memory_space<vmem>>, %arg3: memref<1x32xf32, #tpu.memory_space<vmem>>, %arg4: memref<1x32xf32, #tpu.memory_space<vmem>>, %arg5: memref<1x32xf32, #tpu.memory_space<vmem>>, %arg6: memref<128x32xf32, #tpu.memory_space<vmem>>) attributes {dimension_semantics = [#tpu.dimension_semantics<parallel>], iteration_bounds = array<i64: 1>, scalar_prefetch = 0 : i64, scratch_operands = 0 : i64, tpu.core_type = #tpu.core_type<tc>, window_params = [{transform_indices = @transform_0, window_bounds = array<i64: 128, 196>}, {pipeline_mode = #tpu.pipeline_mode<synchronous>, transform_indices = @transform_1, window_bounds = array<i64: 196, 32>}, {pipeline_mode = #tpu.pipeline_mode<synchronous>, transform_indices = @transform_2, window_bounds = array<i64: 1, 32>}, {pipeline_mode = #tpu.pipeline_mode<synchronous>, transform_indices = @transform_3, window_bounds = array<i64: 1, 32>}, {pipeline_mode = #tpu.pipeline_mode<synchronous>, transform_indices = @transform_4, window_bounds = array<i64: 1, 32>}, {transform_indices = @transform_5, window_bounds = array<i64: 128, 32>}]} {
    %c0 = arith.constant 0 : index
    %c0_0 = arith.constant 0 : index
    %0 = vector.load %arg1[%c0, %c0_0] : memref<128x196xbf16, #tpu.memory_space<vmem>>, vector<128x196xbf16>
    %c0_1 = arith.constant 0 : index
    %c0_2 = arith.constant 0 : index
    %1 = vector.load %arg2[%c0_1, %c0_2] : memref<196x32xbf16, #tpu.memory_space<vmem>>, vector<196x32xbf16>
    %cst = arith.constant dense<0.000000e+00> : vector<128x32xf32>
    %2 = tpu.matmul %0, %1, %cst {dimension_numbers = #tpu.dot_dimension_numbers<[1], [0], [0], [1], [0, 0, 1, 1], [], []>} : vector<128x196xbf16>, vector<196x32xbf16>, vector<128x32xf32> -> vector<128x32xf32>
    %c0_3 = arith.constant 0 : index
    %c0_4 = arith.constant 0 : index
    %3 = vector.load %arg3[%c0_3, %c0_4] : memref<1x32xf32, #tpu.memory_space<vmem>>, vector<1x32xf32>
    %4 = vector.broadcast %3 : vector<1x32xf32> to vector<128x32xf32>
    %5 = arith.addf %2, %4 : vector<128x32xf32>
    %cst_5 = arith.constant dense<0.000000e+00> : vector<128xf32>
    %6 = vector.multi_reduction <add>, %5, %cst_5 [1] : vector<128x32xf32> to vector<128xf32>
    %7 = vector.shape_cast %6 : vector<128xf32> to vector<128x1xf32>
    %cst_6 = arith.constant 3.200000e+01 : f32
    %8 = vector.broadcast %cst_6 : f32 to vector<128x1xf32>
    %9 = arith.divf %7, %8 : vector<128x1xf32>
    %10 = arith.mulf %5, %5 : vector<128x32xf32>
    %cst_7 = arith.constant dense<0.000000e+00> : vector<128xf32>
    %11 = vector.multi_reduction <add>, %10, %cst_7 [1] : vector<128x32xf32> to vector<128xf32>
    %12 = vector.shape_cast %11 : vector<128xf32> to vector<128x1xf32>
    %cst_8 = arith.constant 3.200000e+01 : f32
    %13 = vector.broadcast %cst_8 : f32 to vector<128x1xf32>
    %14 = arith.divf %12, %13 : vector<128x1xf32>
    %15 = arith.mulf %9, %9 : vector<128x1xf32>
    %16 = arith.subf %14, %15 : vector<128x1xf32>
    %cst_9 = arith.constant 0.000000e+00 : f32
    %17 = vector.broadcast %cst_9 : f32 to vector<128x1xf32>
    %18 = arith.maximumf %16, %17 : vector<128x1xf32>
    %19 = vector.broadcast %9 : vector<128x1xf32> to vector<128x32xf32>
    %20 = arith.subf %5, %19 : vector<128x32xf32>
    %cst_10 = arith.constant 9.99999974E-6 : f32
    %21 = vector.broadcast %cst_10 : f32 to vector<128x1xf32>
    %22 = arith.addf %18, %21 : vector<128x1xf32>
    %23 = math.rsqrt %22 : vector<128x1xf32>
    %24 = vector.broadcast %23 : vector<128x1xf32> to vector<128x32xf32>
    %25 = arith.mulf %20, %24 : vector<128x32xf32>
    %c0_11 = arith.constant 0 : index
    %c0_12 = arith.constant 0 : index
    %26 = vector.load %arg4[%c0_11, %c0_12] : memref<1x32xf32, #tpu.memory_space<vmem>>, vector<1x32xf32>
    %27 = vector.broadcast %26 : vector<1x32xf32> to vector<128x32xf32>
    %28 = arith.mulf %25, %27 : vector<128x32xf32>
    %c0_13 = arith.constant 0 : index
    %c0_14 = arith.constant 0 : index
    %29 = vector.load %arg5[%c0_13, %c0_14] : memref<1x32xf32, #tpu.memory_space<vmem>>, vector<1x32xf32>
    %30 = vector.broadcast %29 : vector<1x32xf32> to vector<128x32xf32>
    %31 = arith.addf %28, %30 : vector<128x32xf32>
    %c0_15 = arith.constant 0 : index
    %c0_16 = arith.constant 0 : index
    %32 = vector.load %arg6[%c0_15, %c0_16] : memref<128x32xf32, #tpu.memory_space<vmem>>, vector<128x32xf32>
    tpu.vector_store %arg6[%c0_15, %c0_16], %31 {strides = array<i32>} : memref<128x32xf32, #tpu.memory_space<vmem>>, vector<128x32xf32>,
    return
  }
  func.func @transform_0(%arg0: i32) -> (i32, i32) {
    %c0_i32 = arith.constant 0 : i32
    %c0_i32_0 = arith.constant 0 : i32
    return %arg0, %c0_i32 : i32, i32
  }
  func.func @transform_1(%arg0: i32) -> (i32, i32) {
    %c0_i32 = arith.constant 0 : i32
    %c0_i32_0 = arith.constant 0 : i32
    %c0_i32_1 = arith.constant 0 : i32
    return %c0_i32, %c0_i32_0 : i32, i32
  }
  func.func @transform_2(%arg0: i32) -> (i32, i32) {
    %c0_i32 = arith.constant 0 : i32
    %c0_i32_0 = arith.constant 0 : i32
    %c0_i32_1 = arith.constant 0 : i32
    return %c0_i32, %c0_i32_0 : i32, i32
  }
  func.func @transform_3(%arg0: i32) -> (i32, i32) {
    %c0_i32 = arith.constant 0 : i32
    %c0_i32_0 = arith.constant 0 : i32
    %c0_i32_1 = arith.constant 0 : i32
    return %c0_i32, %c0_i32_0 : i32, i32
  }
  func.func @transform_4(%arg0: i32) -> (i32, i32) {
    %c0_i32 = arith.constant 0 : i32
    %c0_i32_0 = arith.constant 0 : i32
    %c0_i32_1 = arith.constant 0 : i32
    return %c0_i32, %c0_i32_0 : i32, i32
  }
  func.func @transform_5(%arg0: i32) -> (i32, i32) {
    %c0_i32 = arith.constant 0 : i32
    %c0_i32_0 = arith.constant 0 : i32
    return %arg0, %c0_i32 : i32, i32
  }
}

</mosaic_0001>

<bundles_post_ra>
// kernel: tpu_custom_call.1
= control target key start
LH: loop header
LB: loop body
LE: loop exit
PB: predicated region body
PF: predicated region fallthrough
CT: control target
= control target key end

     0   :  { %vm238_vm0 = vcmask 1041408   ;;  %vm213_vm1 = vcmask 556032   ;;  %vm340_vm2 = vcmask 261120   ;;  %s1600_s1 = inlined_call_operand.vmem [shape: bf16[196,32], index: 1, kind: input, shape index: {}]   ;;  %s1601_s0 = inlined_call_operand.vmem [shape: bf16[128,196], index: 0, kind: input, shape index: {}]   ;;  %s1602_s2 = inlined_call_operand.vmem [shape: f32[1,32], index: 2, kind: input, shape index: {}]   ;;  %s1603_s3 = inlined_call_operand.vmem [shape: f32[1,32], index: 3, kind: input, shape index: {}]   ;;  %s1604_s4 = inlined_call_operand.vmem [shape: f32[1,32], index: 4, kind: input, shape index: {}]   ;;  %s1605_s5 = inlined_call_operand.vmem [shape: f32[128,32], index: 5, kind: output, shape index: {}]  }
   0x1   :  { %v951_v0 = vld [vmem:[%s1600_s1 + $0x38] sm:$0xff]  ;;  %v61_v1 = vld [vmem:[%s1600_s1 + $0x60] sm:$0x3]  ;;  %v950_v3 = vld [vmem:[%s1600_s1 + $0x30] sm:$0xff] }
   0x2   :  { %v187_v2 = vunpack.c.l.b16 %v61_v1  ;;  %242 = vmatpush.bf16.msra.mxu0 %v951_v0  ;;  %956 = vmatpush.bf16.msra.mxu2 %v951_v0  ;;  %v955_v6 = vld [vmem:[%s1600_s1 + $0x58] sm:$0xff]  ;;  %v949_v7 = vld [vmem:[%s1600_s1 + $0x28] sm:$0xff]  ;;  %v954_v8 = vld [vmem:[%s1600_s1 + $0x50] sm:$0xff] }
   0x3   :  { %v948_v9 = vld [vmem:[%s1600_s1 + $0x20] sm:$0xff]  ;;  %v953_v10 = vld [vmem:[%s1600_s1 + $0x48] sm:$0xff]  ;;  %v947_v11 = vld [vmem:[%s1600_s1 + $0x18] sm:$0xff] }
   0x4   :  { %v200_v4 = vpack.c.b16 %v187_v2, %v187_v2  ;;  %v952_v12 = vld [vmem:[%s1600_s1 + $0x40] sm:$0xff]  ;;  %v946_v13 = vld [vmem:[%s1600_s1 + $0x10] sm:$0xff]  ;;  %v812_v15 = vld [vmem:[%s1601_s0 + $0x8] sm:$0xf0] }
   0x5   :  { %v928_v14 = vld [vmem:[%s1601_s0 + $0x4] sm:$0xf]  ;;  %v938_v16 = vld [vmem:[%s1601_s0 + $0x54] sm:$0xf]  ;;  %v852_v17 = vld [vmem:[%s1601_s0 + $0x58] sm:$0xf0] }
   0x6   :  { %v240_v5 = vsel %vm238_vm0, %v200_v4, 0  ;;  %243 = vmatpush.bf16.msra.mxu0 %v950_v3  ;;  %957 = vmatpush.bf16.msra.mxu2 %v950_v3  ;;  %v815_v18 = vor.u32 %v928_v14, %v812_v15  ;;  %v945_v19 = vld [vmem:[%s1600_s1 + $0x8] sm:$0xff]  ;;  %v855_v20 = vor.u32 %v938_v16, %v852_v17  ;;  %v944_v21 = vld [vmem:[%s1600_s1] sm:$0xff]  ;;  %v930_v28 = vld [vmem:[%s1601_s0 + $0x14] sm:$0xf] }
   0x7   :  { %294 = vmatpush.bf16.msra.mxu1 %v240_v5  ;;  %964 = vmatpush.bf16.msra.mxu3 %v240_v5  ;;  %v810_v22 = vld [vmem:[%s1601_s0] sm:$0xf]  ;;  %v929_v23 = vld [vmem:[%s1601_s0 + $0x4] sm:$0xf0]  ;;  %v820_v29 = vld [vmem:[%s1601_s0 + $0x18] sm:$0xf0] }
   0x8   :  { %v842_v24 = vld [vmem:[%s1601_s0 + $0x40] sm:$0xf]  ;;  %v937_v25 = vld [vmem:[%s1601_s0 + $0x44] sm:$0xf0]  ;;  %v811_v26 = vor.u32 %v929_v23, %v810_v22  ;;  %v940_v30 = vld [vmem:[%s1601_s0 + $0x64] sm:$0xf]  ;;  %v823_v32 = vor.u32 %v930_v28, %v820_v29 }
   0x9   :  { %v843_v27 = vor.u32 %v937_v25, %v842_v24  ;;  %v860_v31 = vld [vmem:[%s1601_s0 + $0x68] sm:$0xf0]  ;;  %v818_v34 = vld [vmem:[%s1601_s0 + $0x10] sm:$0xf]  ;;  %v931_v35 = vld [vmem:[%s1601_s0 + $0x14] sm:$0xf0] }
   0xa   :  { %244 = vmatpush.bf16.msra.mxu0 %v949_v7  ;;  %958 = vmatpush.bf16.msra.mxu2 %v949_v7  ;;  %v863_v33 = vor.u32 %v940_v30, %v860_v31  ;;  %v850_v36 = vld [vmem:[%s1601_s0 + $0x50] sm:$0xf]  ;;  %v939_v37 = vld [vmem:[%s1601_s0 + $0x54] sm:$0xf0]  ;;  %v819_v38 = vor.u32 %v931_v35, %v818_v34  ;;  %v932_v40 = vld [vmem:[%s1601_s0 + $0x24] sm:$0xf] }
   0xb   :  { %295 = vmatpush.bf16.msra.mxu1 %v955_v6  ;;  %965 = vmatpush.bf16.msra.mxu3 %v955_v6  ;;  %v851_v39 = vor.u32 %v939_v37, %v850_v36  ;;  %v828_v41 = vld [vmem:[%s1601_s0 + $0x28] sm:$0xf0]  ;;  %v942_v43 = vld [vmem:[%s1601_s0 + $0x74] sm:$0xf]  ;;  %v826_v44 = vld [vmem:[%s1601_s0 + $0x20] sm:$0xf] }
   0xc   :  { %v831_v42 = vor.u32 %v932_v40, %v828_v41  ;;  %v933_v45 = vld [vmem:[%s1601_s0 + $0x24] sm:$0xf0]  ;;  %v868_v46 = vld [vmem:[%s1601_s0 + $0x78] sm:$0xf0]  ;;  %v858_v47 = vld [vmem:[%s1601_s0 + $0x60] sm:$0xf] }
   0xd   :  { %v941_v48 = vld [vmem:[%s1601_s0 + $0x64] sm:$0xf0]  ;;  %v871_v49 = vor.u32 %v942_v43, %v868_v46  ;;  %v827_v50 = vor.u32 %v933_v45, %v826_v44  ;;  %v934_v52 = vld [vmem:[%s1601_s0 + $0x34] sm:$0xf]  ;;  %v836_v53 = vld [vmem:[%s1601_s0 + $0x38] sm:$0xf0] }
   0xe   :  { %245 = vmatpush.bf16.msra.mxu0 %v948_v9  ;;  %959 = vmatpush.bf16.msra.mxu2 %v948_v9  ;;  %v859_v51 = vor.u32 %v941_v48, %v858_v47  ;;  %v839_v54 = vor.u32 %v934_v52, %v836_v53  ;;  %v834_v55 = vld [vmem:[%s1601_s0 + $0x30] sm:$0xf]  ;;  %v935_v56 = vld [vmem:[%s1601_s0 + $0x34] sm:$0xf0]  ;;  %v936_v61 = vld [vmem:[%s1601_s0 + $0x44] sm:$0xf] }
   0xf   :  { %296 = vmatpush.bf16.msra.mxu1 %v954_v8  ;;  %966 = vmatpush.bf16.msra.mxu3 %v954_v8  ;;  %v866_v57 = vld [vmem:[%s1601_s0 + $0x70] sm:$0xf]  ;;  %v943_v58 = vld [vmem:[%s1601_s0 + $0x74] sm:$0xf0]  ;;  %v835_v59 = vor.u32 %v935_v56, %v834_v55  ;;  %v844_v62 = vld [vmem:[%s1601_s0 + $0x48] sm:$0xf0] }
  0x10   :  { %v867_v60 = vor.u32 %v943_v58, %v866_v57  ;;  %v847_v63 = vor.u32 %v936_v61, %v844_v62  ;;  %v1184_v1 = vld [vmem:[%s1602_s2] ss:$0 sm:$0xff] }
  0x12   :  { %246 = vmatpush.bf16.msra.mxu0 %v947_v11  ;;  %960 = vmatpush.bf16.msra.mxu2 %v947_v11 }
  0x13   :  { %297 = vmatpush.bf16.msra.mxu1 %v953_v10  ;;  %967 = vmatpush.bf16.msra.mxu3 %v953_v10 }
  0x16   :  { %247 = vmatpush.bf16.msra.mxu0 %v946_v13  ;;  %961 = vmatpush.bf16.msra.mxu2 %v946_v13 }
  0x17   :  { %298 = vmatpush.bf16.msra.mxu1 %v952_v12  ;;  %968 = vmatpush.bf16.msra.mxu3 %v952_v12 }
  0x1a   :  { %920 = vmatmul.msk.bf16.vlgmr.msra.gmra.mxu1 %vm213_vm1, %v815_v18  ;;  %248 = vmatpush.bf16.msra.mxu0 %v945_v19 }
  0x1b   :  { %925 = vmatmul.msk.bf16.vlgmr.msra.gmra.mxu3 %vm213_vm1, %v855_v20  ;;  %962 = vmatpush.bf16.msra.mxu2 %v945_v19 }
  0x1e   :  { %249 = vmatpush.bf16.msra.mxu0 %v944_v21 }
  0x1f   :  { %963 = vmatpush.bf16.msra.mxu2 %v944_v21 }
  0x21   :  { %250 = vmatmul.bf16.vlgmr.msra.gmra.mxu0 %v811_v26 }
  0x22   :  { %270 = vmatmul.bf16.vlgmr.msra.gmra.mxu2 %v843_v27 }
  0x2a   :  { %921 = vmatmul.msk.bf16.gmra.mxu1 %vm213_vm1, %v823_v32 }
  0x2b   :  { %926 = vmatmul.msk.bf16.gmra.mxu3 %vm213_vm1, %v863_v33 }
  0x31   :  { %255 = vmatmul.bf16.gmra.mxu0 %v819_v38 }
  0x32   :  { %275 = vmatmul.bf16.gmra.mxu2 %v851_v39 }
  0x3a   :  { %922 = vmatmul.msk.bf16.gmra.mxu1 %vm213_vm1, %v831_v42 }
  0x3b   :  { %927 = vmatmul.msk.bf16.gmra.mxu3 %vm213_vm1, %v871_v49 }
  0x41   :  { %260 = vmatmul.bf16.gmra.mxu0 %v827_v50 }
  0x42   :  { %280 = vmatmul.bf16.gmra.mxu2 %v859_v51 }
  0x4a   :  { %923 = vmatmul.msk.bf16.gmra.mxu1 %vm213_vm1, %v839_v54 }
  0x51   :  { %265 = vmatmul.bf16.gmra.mxu0 %v835_v59 }
  0x52   :  { %285 = vmatmul.bf16.gmra.mxu2 %v867_v60 }
  0x5a   :  { %924 = vmatmul.msk.bf16.gmra.mxu1 %vm213_vm1, %v847_v63 }
  0x97   :  { %v300_v0 = vpop.f32.mrf.mxu1 }
  0x9e   :  { %v251_v3 = vpop.f32.mrf.mxu0  ;;  %v325_v24 = vpop.f32.mrf.mxu3 }
  0x9f   :  { %v302_v2 = vpop.f32.mrf.mxu1  ;;  %v252_v4 = vadd.f32 %v1184_v1, %v251_v3 }
  0xa1   :  { %v1187_v5 = vadd.f32 %v300_v0, %v252_v4 }
  0xa3   :  { %v341_v6 = vsel %vm340_vm2, %v1187_v5, 0.0  ;;  %v412_v7 = vmul.f32 %v1187_v5, %v1187_v5 }
  0xa4   :  { %342 = vadd.xlane.f32.xlu0 %v341_v6 }
  0xa5   :  { %v1193_v8 = vpop.f32.mrf.mxu2  ;;  %v428_v9 = vsel %vm340_vm2, %v412_v7, 0.0 }
  0xa6   :  { %v253_v11 = vpop.f32.mrf.mxu0  ;;  %429 = vadd.xlane.f32.xlu1 %v428_v9  ;;  %v327_v40 = vpop.f32.mrf.mxu3 }
  0xa7   :  { %v305_v10 = vpop.f32.mrf.mxu1  ;;  %v254_v12 = vadd.f32 %v1184_v1, %v253_v11 }
  0xa9   :  { %v1197_v13 = vadd.f32 %v302_v2, %v254_v12 }
  0xab   :  { %v344_v14 = vsel %vm340_vm2, %v1197_v13, 0.0  ;;  %v413_v15 = vmul.f32 %v1197_v13, %v1197_v13 }
  0xac   :  { %345 = vadd.xlane.f32.xlu0 %v344_v14 }
  0xad   :  { %v1203_v16 = vpop.f32.mrf.mxu2  ;;  %v431_v17 = vsel %vm340_vm2, %v413_v15, 0.0  ;;  %v272_v15 = vadd.f32 %v1184_v1, %v1193_v8 }
  0xae   :  { %v256_v19 = vpop.f32.mrf.mxu0  ;;  %432 = vadd.xlane.f32.xlu2 %v431_v17  ;;  %v330_v51 = vpop.f32.mrf.mxu3 }
  0xaf   :  { %v307_v18 = vpop.f32.mrf.mxu1  ;;  %v257_v20 = vadd.f32 %v1184_v1, %v256_v19 }
  0xb1   :  { %v1207_v21 = vadd.f32 %v305_v10, %v257_v20 }
  0xb3   :  { %v347_v22 = vsel %vm340_vm2, %v1207_v21, 0.0  ;;  %v414_v23 = vmul.f32 %v1207_v21, %v1207_v21 }
  0xb4   :  { %348 = vadd.xlane.f32.xlu1 %v347_v22 }
  0xb5   :  { %v276_v25 = vpop.f32.mrf.mxu2  ;;  %v434_v26 = vsel %vm340_vm2, %v414_v23, 0.0 }
  0xb6   :  { %v277_v27 = vadd.f32 %v1184_v1, %v276_v25  ;;  %v258_v29 = vpop.f32.mrf.mxu0  ;;  %435 = vadd.xlane.f32.xlu0 %v434_v26  ;;  %v332_v10 = vpop.f32.mrf.mxu3 }
  0xb7   :  { %v310_v28 = vpop.f32.mrf.mxu1  ;;  %v259_v32 = vadd.f32 %v1184_v1, %v258_v29 }
  0xb8   :  { %v1215_v30 = vadd.f32 %v325_v24, %v277_v27 }
  0xb9   :  { %v1224_v39 = vadd.f32 %v307_v18, %v259_v32 }
  0xba   :  { %v422_v31 = vmul.f32 %v1215_v30, %v1215_v30  ;;  %v371_v33 = vsel %vm340_vm2, %v1215_v30, 0.0 }
  0xbb   :  { %v350_v43 = vsel %vm340_vm2, %v1224_v39, 0.0  ;;  %v415_v52 = vmul.f32 %v1224_v39, %v1224_v39 }
  0xbc   :  { %v458_v34 = vsel %vm340_vm2, %v422_v31, 0.0  ;;  %372 = vadd.xlane.f32.xlu1 %v371_v33  ;;  %v274_v33 = vadd.f32 %v1184_v1, %v1203_v16 }
  0xbd   :  { %v278_v35 = vpop.f32.mrf.mxu2  ;;  %459 = vadd.xlane.f32.xlu2 %v458_v34  ;;  %v437_v57 = vsel %vm340_vm2, %v415_v52, 0.0 }
  0xbe   :  { %v279_v36 = vadd.f32 %v1184_v1, %v278_v35  ;;  %v261_v38 = vpop.f32.mrf.mxu0  ;;  %v335_v27 = vpop.f32.mrf.mxu3 }
  0xbf   :  { %v312_v37 = vpop.f32.mrf.mxu1  ;;  %v262_v44 = vadd.f32 %v1184_v1, %v261_v38 }
  0xc0   :  { %v1226_v41 = vadd.f32 %v327_v40, %v279_v36 }
  0xc1   :  { %v1239_v53 = vadd.f32 %v310_v28, %v262_v44 }
  0xc2   :  { %v423_v42 = vmul.f32 %v1226_v41, %v1226_v41  ;;  %v374_v45 = vsel %vm340_vm2, %v1226_v41, 0.0 }
  0xc3   :  { %v353_v59 = vsel %vm340_vm2, %v1239_v53, 0.0  ;;  %v416_v63 = vmul.f32 %v1239_v53, %v1239_v53 }
  0xc4   :  { %351 = vadd.xlane.f32.xlu1 %v350_v43  ;;  %v461_v46 = vsel %vm340_vm2, %v423_v42, 0.0 }
  0xc5   :  { %v281_v47 = vpop.f32.mrf.mxu2  ;;  %375 = vadd.xlane.f32.xlu2 %v374_v45  ;;  %462 = vadd.xlane.f32.xlu0 %v461_v46  ;;  %v440_v7 = vsel %vm340_vm2, %v416_v63, 0.0 }
  0xc6   :  { %v282_v48 = vadd.f32 %v1184_v1, %v281_v47  ;;  %v263_v50 = vpop.f32.mrf.mxu0  ;;  %v337_v16 = vpop.f32.mrf.mxu3 }
  0xc7   :  { %v315_v49 = vpop.f32.mrf.mxu1  ;;  %v264_v55 = vadd.f32 %v1184_v1, %v263_v50 }
  0xc8   :  { %v1241_v54 = vadd.f32 %v330_v51, %v282_v48 }
  0xc9   :  { %v1247_v58 = vadd.f32 %v312_v37, %v264_v55 }
  0xca   :  { %v377_v56 = vsel %vm340_vm2, %v1241_v54, 0.0  ;;  %v424_v61 = vmul.f32 %v1241_v54, %v1241_v54 }
  0xcb   :  { %v417_v0 = vmul.f32 %v1247_v58, %v1247_v58  ;;  %v356_v19 = vsel %vm340_vm2, %v1247_v58, 0.0 }
  0xcc   :  { %438 = vadd.xlane.f32.xlu1 %v437_v57  ;;  %v464_v4 = vsel %vm340_vm2, %v424_v61, 0.0  ;;  %v1007_v57 = vmov 32.0  }
  0xcd   :  { %354 = vadd.xlane.f32.xlu2 %v353_v59  ;;  %378 = vadd.xlane.f32.xlu0 %v377_v56  ;;  %v283_v62 = vpop.f32.mrf.mxu2  ;;  %v443_v9 = vsel %vm340_vm2, %v417_v0, 0.0  ;;  %973 = vrcp.f32 %v1007_v57 }
  0xce   :  { %v266_v2 = vpop.f32.mrf.mxu0  ;;  %v284_v3 = vadd.f32 %v1184_v1, %v283_v62 }
  0xcf   :  { %v317_v60 = vpop.f32.mrf.mxu1  ;;  %v267_v6 = vadd.f32 %v1184_v1, %v266_v2 }
  0xd0   :  { %v1262_v11 = vadd.f32 %v332_v10, %v284_v3 }
  0xd1   :  { %v1264_v12 = vadd.f32 %v315_v49, %v267_v6 }
  0xd2   :  { %v380_v17 = vsel %vm340_vm2, %v1262_v11, 0.0  ;;  %v425_v50 = vmul.f32 %v1262_v11, %v1262_v11 }
  0xd3   :  { %v359_v20 = vsel %vm340_vm2, %v1264_v12, 0.0  ;;  %v418_v23 = vmul.f32 %v1264_v12, %v1264_v12  ;;  %v974_v59 = vpop.eup %973 }
  0xd4   :  { %465 = vadd.xlane.f32.xlu1 %v464_v4  ;;  %v467_v55 = vsel %vm340_vm2, %v425_v50, 0.0  ;;  %vm394_vm3 = vweird.f32 %v974_v59 }
  0xd5   :  { %441 = vadd.xlane.f32.xlu2 %v440_v7  ;;  %444 = vadd.xlane.f32.xlu0 %v443_v9  ;;  %v286_v22 = vpop.f32.mrf.mxu2  ;;  %v446_v28 = vsel %vm340_vm2, %v418_v23, 0.0 }
  0xd6   :  { %v268_v24 = vpop.f32.mrf.mxu0  ;;  %v287_v25 = vadd.f32 %v1184_v1, %v286_v22 }
  0xd7   :  { %v320_v14 = vpop.f32.mrf.mxu1  ;;  %v269_v26 = vadd.f32 %v1184_v1, %v268_v24 }
  0xd8   :  { %v1270_v18 = vadd.f32 %v320_v14, %v272_v15  ;;  %v1288_v34 = vadd.f32 %v335_v27, %v287_v25 }
  0xd9   :  { %v1290_v35 = vadd.f32 %v317_v60, %v269_v26  ;;  %v390_v60 = vmul.f32 32.0, %v974_v59 }
  0xda   :  { %v420_v8 = vmul.f32 %v1270_v18, %v1270_v18  ;;  %v365_v29 = vsel %vm340_vm2, %v1270_v18, 0.0  ;;  %v383_v38 = vsel %vm340_vm2, %v1288_v34, 0.0  ;;  %v426_v51 = vmul.f32 %v1288_v34, %v1288_v34 }
  0xdb   :  { %v362_v40 = vsel %vm340_vm2, %v1290_v35, 0.0  ;;  %v419_v46 = vmul.f32 %v1290_v35, %v1290_v35  ;;  %v391_v61 = vsub.f32 1.0, %v390_v60 }
  0xdc   :  { %381 = vadd.xlane.f32.xlu1 %v380_v17  ;;  %v452_v31 = vsel %vm340_vm2, %v420_v8, 0.0  ;;  %v470_v56 = vsel %vm340_vm2, %v426_v51, 0.0 }
  0xdd   :  { %357 = vadd.xlane.f32.xlu2 %v356_v19  ;;  %360 = vadd.xlane.f32.xlu0 %v359_v20  ;;  %v288_v37 = vpop.f32.mrf.mxu2  ;;  %v449_v48 = vsel %vm340_vm2, %v419_v46, 0.0  ;;  %v392_v62 = vmul.f32 %v974_v59, %v391_v61 }
  0xde   :  { %v289_v42 = vadd.f32 %v1184_v1, %v288_v37 }
  0xdf   :  { %v322_v32 = vpop.f32.mrf.mxu1  ;;  %v393_v63 = vadd.f32 %v974_v59, %v392_v62 }
  0xe0   :  { %v1292_v36 = vadd.f32 %v322_v32, %v274_v33  ;;  %v1303_v45 = vadd.f32 %v337_v16, %v289_v42 }
  0xe1   :  { %v1320_v0 = vsel %vm394_vm3, %v974_v59, %v393_v63 }
  0xe2   :  { %v368_v43 = vsel %vm340_vm2, %v1292_v36, 0.0  ;;  %v421_v44 = vmul.f32 %v1292_v36, %v1292_v36  ;;  %v386_v1 = vsel %vm340_vm2, %v1303_v45, 0.0  ;;  %v427_v49 = vmul.f32 %v1303_v45, %v1303_v45 }
  0xe4   :  { %447 = vadd.xlane.f32.xlu1 %v446_v28  ;;  %v455_v47 = vsel %vm340_vm2, %v421_v44, 0.0  ;;  %v473_v52 = vsel %vm340_vm2, %v427_v49, 0.0  ;;  %v1343_v49 = vld [vmem:[%s1603_s3] ss:$0 sm:$0xff] }
  0xe5   :  { %366 = vadd.xlane.f32.xlu2 %v365_v29  ;;  %453 = vadd.xlane.f32.xlu0 %v452_v31 }
  0xec   :  { %363 = vadd.xlane.f32.xlu1 %v362_v40 }
  0xed   :  { %384 = vadd.xlane.f32.xlu2 %v383_v38  ;;  %369 = vadd.xlane.f32.xlu0 %v368_v43 }
  0xf4   :  { %456 = vadd.xlane.f32.xlu1 %v455_v47 }
  0xf5   :  { %450 = vadd.xlane.f32.xlu2 %v449_v48  ;;  %387 = vadd.xlane.f32.xlu0 %v386_v1 }
  0xfc   :  { %474 = vadd.xlane.f32.xlu1 %v473_v52 }
  0xfd   :  { %468 = vadd.xlane.f32.xlu2 %v467_v55  ;;  %471 = vadd.xlane.f32.xlu0 %v470_v56  ;;  %v1351_v56 = vld [vmem:[%s1604_s4] ss:$0 sm:$0xff] }
 0x117   :  { %v343_v2 = vpop.xlane.xlu0 %342 }
 0x118   :  { %v396_v3 = vmul.f32 %v1320_v0, %v343_v2 }
 0x119   :  { %v430_v4 = vpop.xlane.xlu1 %429 }
 0x11a   :  { %v492_v6 = vmul.f32 %v396_v3, %v396_v3  ;;  %v476_v7 = vmul.f32 %v430_v4, %v1320_v0  ;;  %v540_v1 = vsub.f32 %v1187_v5, %v396_v3 }
 0x11c   :  { %v508_v9 = vsub.f32 %v476_v7, %v492_v6 }
 0x11e   :  { %v524_v10 = vmax.f32 %v508_v9, 0.0 }
 0x11f   :  { %v346_v14 = vpop.xlane.xlu0 %345 }
 0x120   :  { %v556_v15 = vadd.f32 1e-05, %v524_v10  ;;  %v1325_v17 = vmul.f32 %v1320_v0, %v346_v14 }
 0x121   :  { %v433_v19 = vpop.xlane.xlu2 %432 }
 0x122   :  { %975 = vrsqrt.f32 %v556_v15  ;;  %v493_v20 = vmul.f32 %v1325_v17, %v1325_v17  ;;  %v477_v22 = vmul.f32 %v433_v19, %v1320_v0  ;;  %vm578_vm5 = vweird.f32 %v556_v15 }
 0x124   :  { %v509_v23 = vsub.f32 %v477_v22, %v493_v20 }
 0x126   :  { %v525_v24 = vmax.f32 %v509_v23, 0.0 }
 0x127   :  { %v349_v8 = vpop.xlane.xlu1 %348 }
 0x128   :  { %v976_v25 = vpop.eup %975  ;;  %v1331_v26 = vmul.f32 %v1320_v0, %v349_v8  ;;  %v557_v28 = vadd.f32 1e-05, %v525_v24 }
 0x129   :  { %v573_v27 = vmul.f32 %v976_v25, %v556_v15  ;;  %v436_v29 = vpop.xlane.xlu0 %435  ;;  %vm579_vm4 = vweird.f32 %v976_v25  ;;  %v541_v15 = vsub.f32 %v1197_v13, %v1325_v17 }
 0x12a   :  { %v494_v31 = vmul.f32 %v1331_v26, %v1331_v26  ;;  %v478_v32 = vmul.f32 %v436_v29, %v1320_v0  ;;  %977 = vrsqrt.f32 %v557_v28  ;;  %vm580_vm6 = vmor %vm578_vm5, %vm579_vm4  ;;  %vm588_vm8 = vweird.f32 %v557_v28 }
 0x12b   :  { %v574_v33 = vmul.f32 %v976_v25, %v573_v27 }
 0x12c   :  { %v510_v37 = vsub.f32 %v478_v32, %v494_v31 }
 0x12d   :  { %v575_v38 = vmul.f32 0.5, %v574_v33 }
 0x12e   :  { %v526_v40 = vmax.f32 %v510_v37, 0.0 }
 0x12f   :  { %v576_v42 = vsub.f32 1.5, %v575_v38  ;;  %v373_v43 = vpop.xlane.xlu1 %372 }
 0x130   :  { %v558_v16 = vadd.f32 1e-05, %v526_v40  ;;  %v460_v44 = vpop.xlane.xlu2 %459  ;;  %v1337_v46 = vmul.f32 %v1320_v0, %v373_v43  ;;  %v978_v47 = vpop.eup %977 }
 0x131   :  { %v577_v48 = vmul.f32 %v976_v25, %v576_v42  ;;  %v583_v50 = vmul.f32 %v978_v47, %v557_v28  ;;  %v486_v52 = vmul.f32 %v460_v44, %v1320_v0  ;;  %vm589_vm7 = vweird.f32 %v978_v47 }
 0x132   :  { %979 = vrsqrt.f32 %v558_v16  ;;  %v502_v55 = vmul.f32 %v1337_v46, %v1337_v46  ;;  %vm590_vm9 = vmor %vm588_vm8, %vm589_vm7  ;;  %vm598_vm11 = vweird.f32 %v558_v16 }
 0x133   :  { %v581_v51 = vsel %vm580_vm6, %v976_v25, %v577_v48  ;;  %v584_v57 = vmul.f32 %v978_v47, %v583_v50 }
 0x134   :  { %v732_v5 = vmul.f32 %v581_v51, %v540_v1  ;;  %v518_v59 = vsub.f32 %v486_v52, %v502_v55 }
 0x135   :  { %v585_v61 = vmul.f32 0.5, %v584_v57 }
 0x136   :  { %v752_v60 = vmul.f32 %v1343_v49, %v732_v5  ;;  %v534_v62 = vmax.f32 %v518_v59, 0.0 }
 0x137   :  { %v352_v63 = vpop.xlane.xlu1 %351  ;;  %v586_v4 = vsub.f32 1.5, %v585_v61 }
 0x138   :  { %v980_v2 = vpop.eup %979  ;;  %v772_v3 = vadd.f32 %v1351_v56, %v752_v60  ;;  %v376_v6 = vpop.xlane.xlu2 %375  ;;  %v566_v10 = vadd.f32 1e-05, %v534_v62  ;;  %v1368_v8 = vmul.f32 %v1320_v0, %v352_v63 }
 0x139   :  { %v463_v7 = vpop.xlane.xlu0 %462  ;;  %v593_v9 = vmul.f32 %v980_v2, %v558_v16  ;;  %v1356_v14 = vmul.f32 %v1320_v0, %v376_v6  ;;  %v587_v19 = vmul.f32 %v978_v47, %v586_v4  ;;  %vm599_vm10 = vweird.f32 %v980_v2 }
 0x13a   :  { %788 = vst.msk [vmem:[%s1605_s5] sm:$0xff] %vm340_vm2, %v772_v3  ;;  %981 = vrsqrt.f32 %v566_v10  ;;  %v487_v23 = vmul.f32 %v463_v7, %v1320_v0  ;;  %v495_v32 = vmul.f32 %v1368_v8, %v1368_v8  ;;  %vm600_vm12 = vmor %vm598_vm11, %vm599_vm10  ;;  %vm678_vm14 = vweird.f32 %v566_v10 }
 0x13b   :  { %v594_v20 = vmul.f32 %v980_v2, %v593_v9  ;;  %v503_v22 = vmul.f32 %v1356_v14, %v1356_v14  ;;  %v591_v24 = vsel %vm590_vm9, %v978_v47, %v587_v19  ;;  %v542_v47 = vsub.f32 %v1207_v21, %v1331_v26 }
 0x13c   :  { %v733_v25 = vmul.f32 %v591_v24, %v541_v15  ;;  %v550_v19 = vsub.f32 %v1215_v30, %v1337_v46 }
 0x13d   :  { %v595_v27 = vmul.f32 0.5, %v594_v20  ;;  %v519_v29 = vsub.f32 %v487_v23, %v503_v22 }
 0x13e   :  { %v753_v31 = vmul.f32 %v1343_v49, %v733_v25 }
 0x13f   :  { %v596_v13 = vsub.f32 1.5, %v595_v27  ;;  %v535_v17 = vmax.f32 %v519_v29, 0.0  ;;  %v439_v28 = vpop.xlane.xlu1 %438 }
 0x140   :  { %v355_v33 = vpop.xlane.xlu2 %354  ;;  %v479_v37 = vmul.f32 %v439_v28, %v1320_v0  ;;  %v982_v40 = vpop.eup %981  ;;  %v773_v42 = vadd.f32 %v1351_v56, %v753_v31 }
 0x141   :  { %v379_v38 = vpop.xlane.xlu0 %378  ;;  %v597_v43 = vmul.f32 %v980_v2, %v596_v13  ;;  %v567_v44 = vadd.f32 1e-05, %v535_v17  ;;  %v673_v48 = vmul.f32 %v982_v40, %v566_v10  ;;  %v1382_v5 = vmul.f32 %v1320_v0, %v355_v33 }
 0x142   :  { %v511_v1 = vsub.f32 %v479_v37, %v495_v32  ;;  %789 = vst.msk [vmem:[%s1605_s5 + $0x8] sm:$0xff] %vm340_vm2, %v773_v42  ;;  %v1385_v16 = vmul.f32 %v1320_v0, %v379_v38  ;;  %vm679_vm13 = vweird.f32 %v982_v40 }
 0x143   :  { %v601_v50 = vsel %vm600_vm12, %v980_v2, %v597_v43  ;;  %983 = vrsqrt.f32 %v567_v44  ;;  %v674_v52 = vmul.f32 %v982_v40, %v673_v48  ;;  %v496_v3 = vmul.f32 %v1382_v5, %v1382_v5  ;;  %vm680_vm15 = vmor %vm678_vm14, %vm679_vm13 }
 0x144   :  { %v734_v51 = vmul.f32 %v601_v50, %v542_v47  ;;  %v527_v55 = vmax.f32 %v511_v1, 0.0  ;;  %v504_v4 = vmul.f32 %v1385_v16, %v1385_v16  ;;  %vm688_vm1 = vweird.f32 %v567_v44 }
 0x145   :  { %v675_v26 = vmul.f32 0.5, %v674_v52  ;;  %v551_v47 = vsub.f32 %v1226_v41, %v1356_v14 }
 0x146   :  { %v754_v21 = vmul.f32 %v1343_v49, %v734_v51  ;;  %v1388_v57 = vadd.f32 1e-05, %v527_v55 }
 0x147   :  { %v466_v59 = vpop.xlane.xlu1 %465  ;;  %v676_v61 = vsub.f32 1.5, %v675_v26 }
 0x148   :  { %v774_v60 = vadd.f32 %v1351_v56, %v754_v21  ;;  %985 = vrsqrt.f32 %v1388_v57  ;;  %v442_v62 = vpop.xlane.xlu2 %441  ;;  %v488_v7 = vmul.f32 %v466_v59, %v1320_v0  ;;  %vm608_vm5 = vweird.f32 %v1388_v57 }
 0x149   :  { %v445_v63 = vpop.xlane.xlu0 %444  ;;  %v984_v2 = vpop.eup %983  ;;  %v480_v6 = vmul.f32 %v442_v62, %v1320_v0  ;;  %v677_v9 = vmul.f32 %v982_v40, %v676_v61  ;;  %v543_v61 = vsub.f32 %v1224_v39, %v1368_v8 }
 0x14a   :  { %790 = vst.msk [vmem:[%s1605_s5 + $0x10] sm:$0xff] %vm340_vm2, %v774_v60  ;;  %v683_v15 = vmul.f32 %v984_v2, %v567_v44  ;;  %v520_v22 = vsub.f32 %v488_v7, %v504_v4  ;;  %vm689_vm0 = vweird.f32 %v984_v2  ;;  %v481_v50 = vmul.f32 %v445_v63, %v1320_v0 }
 0x14b   :  { %v512_v20 = vsub.f32 %v480_v6, %v496_v3  ;;  %v681_v23 = vsel %vm680_vm15, %v982_v40, %v677_v9  ;;  %vm690_vm3 = vmor %vm688_vm1, %vm689_vm0 }
 0x14c   :  { %v684_v24 = vmul.f32 %v984_v2, %v683_v15  ;;  %v742_v25 = vmul.f32 %v681_v23, %v550_v19  ;;  %v536_v29 = vmax.f32 %v520_v22, 0.0 }
 0x14d   :  { %v528_v27 = vmax.f32 %v512_v20, 0.0 }
 0x14e   :  { %v986_v31 = vpop.eup %985  ;;  %v685_v13 = vmul.f32 0.5, %v684_v24  ;;  %v762_v17 = vmul.f32 %v1343_v49, %v742_v25  ;;  %v1410_v30 = vadd.f32 1e-05, %v536_v29 }
 0x14f   :  { %v603_v28 = vmul.f32 %v986_v31, %v1388_v57  ;;  %v1406_v32 = vadd.f32 1e-05, %v528_v27  ;;  %v1408_v10 = vpop.xlane.xlu1 %381  ;;  %vm609_vm4 = vweird.f32 %v986_v31 }
 0x150   :  { %v686_v33 = vsub.f32 1.5, %v685_v13  ;;  %v358_v46 = vpop.xlane.xlu2 %357  ;;  %v782_v38 = vadd.f32 %v1351_v56, %v762_v17  ;;  %vm610_vm6 = vmor %vm608_vm5, %vm609_vm4  ;;  %vm698_vm11 = vweird.f32 %v1410_v30 }
 0x151   :  { %v361_v37 = vpop.xlane.xlu0 %360  ;;  %v604_v40 = vmul.f32 %v986_v31, %v603_v28  ;;  %987 = vrsqrt.f32 %v1406_v32  ;;  %v1416_v43 = vmul.f32 %v1320_v0, %v358_v46  ;;  %vm618_vm9 = vweird.f32 %v1406_v32 }
 0x152   :  { %v687_v42 = vmul.f32 %v984_v2, %v686_v33  ;;  %989 = vrsqrt.f32 %v1410_v30  ;;  %798 = vst.msk [vmem:[%s1605_s5 + $0x50] sm:$0xff] %vm340_vm2, %v782_v38  ;;  %v1428_v55 = vmul.f32 %v1320_v0, %v361_v37  ;;  %v544_v38 = vsub.f32 %v1239_v53, %v1382_v5 }
 0x153   :  { %v605_v48 = vmul.f32 0.5, %v604_v40  ;;  %v497_v44 = vmul.f32 %v1416_v43, %v1416_v43  ;;  %v552_v53 = vsub.f32 %v1241_v54, %v1385_v16 }
 0x154   :  { %v691_v1 = vsel %vm690_vm3, %v984_v2, %v687_v42  ;;  %v498_v57 = vmul.f32 %v1428_v55, %v1428_v55 }
 0x155   :  { %v743_v51 = vmul.f32 %v691_v1, %v551_v47  ;;  %v606_v52 = vsub.f32 1.5, %v605_v48  ;;  %v513_v21 = vsub.f32 %v481_v50, %v497_v44 }
 0x157   :  { %v988_v26 = vpop.eup %987  ;;  %v763_v59 = vmul.f32 %v1343_v49, %v743_v51  ;;  %v607_v60 = vmul.f32 %v986_v31, %v606_v52  ;;  %v448_v41 = vpop.xlane.xlu1 %447  ;;  %v529_v63 = vmax.f32 %v513_v21, 0.0 }
 0x158   :  { %v990_v14 = vpop.eup %989  ;;  %v613_v62 = vmul.f32 %v988_v26, %v1406_v32  ;;  %v367_v2 = vpop.xlane.xlu2 %366  ;;  %v482_v3 = vmul.f32 %v448_v41, %v1320_v0  ;;  %vm619_vm7 = vweird.f32 %v988_v26 }
 0x159   :  { %v454_v4 = vpop.xlane.xlu0 %453  ;;  %v783_v6 = vadd.f32 %v1351_v56, %v763_v59  ;;  %v611_v7 = vsel %vm610_vm6, %v986_v31, %v607_v60  ;;  %v693_v9 = vmul.f32 %v990_v14, %v1410_v30  ;;  %v1440_v20 = vadd.f32 1e-05, %v529_v63  ;;  %vm620_vm10 = vmor %vm618_vm9, %vm619_vm7 }
 0x15a   :  { %v735_v15 = vmul.f32 %v611_v7, %v543_v61  ;;  %v614_v19 = vmul.f32 %v988_v26, %v613_v62  ;;  %v1443_v39 = vmul.f32 %v1320_v0, %v367_v2  ;;  %v514_v22 = vsub.f32 %v482_v3, %v498_v57 }
 0x15b   :  { %799 = vst.msk [vmem:[%s1605_s5 + $0x58] sm:$0xff] %vm340_vm2, %v783_v6  ;;  %v694_v8 = vmul.f32 %v990_v14, %v693_v9  ;;  %991 = vrsqrt.f32 %v1440_v20  ;;  %v484_v31 = vmul.f32 %v454_v4, %v1320_v0  ;;  %vm699_vm8 = vweird.f32 %v990_v14 }
 0x15c   :  { %v755_v23 = vmul.f32 %v1343_v49, %v735_v15  ;;  %v615_v24 = vmul.f32 0.5, %v614_v19  ;;  %v500_v27 = vmul.f32 %v1443_v39, %v1443_v39  ;;  %v530_v29 = vmax.f32 %v514_v22, 0.0  ;;  %vm700_vm12 = vmor %vm698_vm11, %vm699_vm8 }
 0x15d   :  { %v695_v25 = vmul.f32 0.5, %v694_v8  ;;  %v1484_v61 = vmul.f32 %v1320_v0, %v1408_v10  ;;  %vm628_vm14 = vweird.f32 %v1440_v20 }
 0x15e   :  { %v775_v13 = vadd.f32 %v1351_v56, %v755_v23  ;;  %v616_v17 = vsub.f32 1.5, %v615_v24  ;;  %v1455_v33 = vadd.f32 1e-05, %v530_v29  ;;  %v516_v46 = vsub.f32 %v484_v31, %v500_v27 }
 0x15f   :  { %v696_v28 = vsub.f32 1.5, %v695_v25  ;;  %v364_v37 = vpop.xlane.xlu1 %363  ;;  %v505_v22 = vmul.f32 %v1484_v61, %v1484_v61  ;;  %v545_v25 = vsub.f32 %v1247_v58, %v1416_v43  ;;  %v546_v58 = vsub.f32 %v1264_v12, %v1428_v55 }
 0x160   :  { %791 = vst.msk [vmem:[%s1605_s5 + $0x18] sm:$0xff] %vm340_vm2, %v775_v13  ;;  %v617_v40 = vmul.f32 %v988_v26, %v616_v17  ;;  %v385_v42 = vpop.xlane.xlu2 %384  ;;  %993 = vrsqrt.f32 %v1455_v33  ;;  %v532_v1 = vmax.f32 %v516_v46, 0.0  ;;  %v1474_v60 = vmul.f32 %v1320_v0, %v364_v37 }
 0x161   :  { %v370_v47 = vpop.xlane.xlu0 %369  ;;  %v697_v48 = vmul.f32 %v990_v14, %v696_v28  ;;  %v992_v50 = vpop.eup %991  ;;  %v1508_v29 = vmul.f32 %v1320_v0, %v385_v42  ;;  %vm638_vm1 = vweird.f32 %v1455_v33 }
 0x162   :  { %v621_v5 = vsel %vm620_vm10, %v988_v26, %v617_v40  ;;  %v623_v32 = vmul.f32 %v992_v50, %v1440_v20  ;;  %v1470_v21 = vadd.f32 1e-05, %v532_v1  ;;  %v1477_v41 = vmul.f32 %v1320_v0, %v370_v47 }
 0x163   :  { %v736_v44 = vmul.f32 %v621_v5, %v544_v38  ;;  %v701_v51 = vsel %vm700_vm12, %v990_v14, %v697_v48  ;;  %vm629_vm13 = vweird.f32 %v992_v50  ;;  %v499_v10 = vmul.f32 %v1474_v60, %v1474_v60 }
 0x164   :  { %v744_v52 = vmul.f32 %v701_v51, %v552_v53  ;;  %v624_v30 = vmul.f32 %v992_v50, %v623_v32  ;;  %995 = vrsqrt.f32 %v1470_v21  ;;  %v501_v3 = vmul.f32 %v1477_v41, %v1477_v41  ;;  %vm630_vm15 = vmor %vm628_vm14, %vm629_vm13 }
 0x165   :  { %v756_v59 = vmul.f32 %v1343_v49, %v736_v44  ;;  %v506_v1 = vmul.f32 %v1508_v29, %v1508_v29  ;;  %vm658_vm5 = vweird.f32 %v1470_v21 }
 0x166   :  { %v764_v54 = vmul.f32 %v1343_v49, %v744_v52  ;;  %v994_v16 = vpop.eup %993  ;;  %v625_v14 = vmul.f32 0.5, %v624_v30 }
 0x167   :  { %v776_v26 = vadd.f32 %v1351_v56, %v756_v59  ;;  %v457_v62 = vpop.xlane.xlu1 %456  ;;  %v633_v2 = vmul.f32 %v994_v16, %v1455_v33  ;;  %vm639_vm0 = vweird.f32 %v994_v16 }
 0x168   :  { %v784_v63 = vadd.f32 %v1351_v56, %v764_v54  ;;  %v451_v4 = vpop.xlane.xlu2 %450  ;;  %v485_v6 = vmul.f32 %v457_v62, %v1320_v0  ;;  %v626_v9 = vsub.f32 1.5, %v625_v14  ;;  %vm640_vm3 = vmor %vm638_vm1, %vm639_vm0 }
 0x169   :  { %v388_v7 = vpop.xlane.xlu0 %387  ;;  %792 = vst.msk [vmem:[%s1605_s5 + $0x20] sm:$0xff] %vm340_vm2, %v776_v26  ;;  %v483_v57 = vmul.f32 %v451_v4, %v1320_v0  ;;  %v634_v15 = vmul.f32 %v994_v16, %v633_v2 }
 0x16a   :  { %800 = vst.msk [vmem:[%s1605_s5 + $0x60] sm:$0xff] %vm340_vm2, %v784_v63  ;;  %v517_v19 = vsub.f32 %v485_v6, %v501_v3  ;;  %v627_v8 = vmul.f32 %v992_v50, %v626_v9  ;;  %v996_v24 = vpop.eup %995  ;;  %v1512_v20 = vmul.f32 %v1320_v0, %v388_v7 }
 0x16b   :  { %v515_v23 = vsub.f32 %v483_v57, %v499_v10  ;;  %v635_v27 = vmul.f32 0.5, %v634_v15  ;;  %v653_v17 = vmul.f32 %v996_v24, %v1470_v21  ;;  %vm659_vm4 = vweird.f32 %v996_v24 }
 0x16c   :  { %v533_v31 = vmax.f32 %v517_v19, 0.0  ;;  %v631_v13 = vsel %vm630_vm15, %v992_v50, %v627_v8  ;;  %v507_v12 = vmul.f32 %v1512_v20, %v1512_v20  ;;  %vm660_vm6 = vmor %vm658_vm5, %vm659_vm4 }
 0x16d   :  { %v531_v28 = vmax.f32 %v515_v23, 0.0  ;;  %v737_v46 = vmul.f32 %v631_v13, %v545_v25  ;;  %v636_v37 = vsub.f32 1.5, %v635_v27  ;;  %v654_v43 = vmul.f32 %v996_v24, %v653_v17 }
 0x16e   :  { %v1514_v38 = vadd.f32 1e-05, %v533_v31  ;;  %v549_v17 = vsub.f32 %v1292_v36, %v1477_v41 }
 0x16f   :  { %v1519_v40 = vadd.f32 1e-05, %v531_v28  ;;  %v475_v42 = vpop.xlane.xlu1 %474  ;;  %v757_v47 = vmul.f32 %v1343_v49, %v737_v46  ;;  %v637_v48 = vmul.f32 %v994_v16, %v636_v37  ;;  %v655_v5 = vmul.f32 0.5, %v654_v43 }
 0x170   :  { %997 = vrsqrt.f32 %v1514_v38  ;;  %v469_v50 = vpop.xlane.xlu2 %468  ;;  %v491_v51 = vmul.f32 %v475_v42, %v1320_v0  ;;  %vm668_vm9 = vweird.f32 %v1514_v38  ;;  %v547_v37 = vsub.f32 %v1290_v35, %v1474_v60 }
 0x171   :  { %v472_v53 = vpop.xlane.xlu0 %471  ;;  %999 = vrsqrt.f32 %v1519_v40  ;;  %v489_v55 = vmul.f32 %v469_v50, %v1320_v0  ;;  %v777_v33 = vadd.f32 %v1351_v56, %v757_v47  ;;  %v641_v44 = vsel %vm640_vm3, %v994_v16, %v637_v48 }
 0x172   :  { %v490_v32 = vmul.f32 %v472_v53, %v1320_v0  ;;  %v738_v52 = vmul.f32 %v641_v44, %v546_v58  ;;  %v656_v59 = vsub.f32 1.5, %v655_v5  ;;  %v523_v54 = vsub.f32 %v491_v51, %v507_v12 }
 0x173   :  { %v521_v30 = vsub.f32 %v489_v55, %v505_v22  ;;  %793 = vst.msk [vmem:[%s1605_s5 + $0x28] sm:$0xff] %vm340_vm2, %v777_v33  ;;  %v548_v0 = vsub.f32 %v1270_v18, %v1443_v39  ;;  %vm648_vm10 = vweird.f32 %v1519_v40 }
 0x174   :  { %v522_v26 = vsub.f32 %v490_v32, %v506_v1  ;;  %v758_v14 = vmul.f32 %v1343_v49, %v738_v52  ;;  %v657_v62 = vmul.f32 %v996_v24, %v656_v59  ;;  %v539_v2 = vmax.f32 %v523_v54, 0.0 }
 0x175   :  { %v537_v16 = vmax.f32 %v521_v30, 0.0  ;;  %v553_v59 = vsub.f32 %v1262_v11, %v1484_v61  ;;  %v555_v54 = vsub.f32 %v1303_v45, %v1512_v20 }
 0x176   :  { %v998_v63 = vpop.eup %997  ;;  %v538_v3 = vmax.f32 %v522_v26, 0.0  ;;  %v778_v6 = vadd.f32 %v1351_v56, %v758_v14  ;;  %v661_v7 = vsel %vm660_vm6, %v996_v24, %v657_v62  ;;  %v571_v18 = vadd.f32 1e-05, %v539_v2 }
 0x177   :  { %v1000_v4 = vpop.eup %999  ;;  %v663_v9 = vmul.f32 %v998_v63, %v1514_v38  ;;  %v740_v10 = vmul.f32 %v661_v7, %v548_v0  ;;  %v569_v15 = vadd.f32 1e-05, %v537_v16  ;;  %vm669_vm7 = vweird.f32 %v998_v63 }
 0x178   :  { %v643_v57 = vmul.f32 %v1000_v4, %v1519_v40  ;;  %794 = vst.msk [vmem:[%s1605_s5 + $0x30] sm:$0xff] %vm340_vm2, %v778_v6  ;;  %v1547_v39 = vadd.f32 1e-05, %v538_v3  ;;  %vm649_vm8 = vweird.f32 %v1000_v4  ;;  %vm670_vm11 = vmor %vm668_vm9, %vm669_vm7  ;;  %vm728_vm3 = vweird.f32 %v571_v18 }
 0x179   :  { %v664_v21 = vmul.f32 %v998_v63, %v663_v9  ;;  %v760_v19 = vmul.f32 %v1343_v49, %v740_v10  ;;  %1001 = vrsqrt.f32 %v569_v15  ;;  %vm650_vm12 = vmor %vm648_vm10, %vm649_vm8  ;;  %vm708_vm15 = vweird.f32 %v569_v15 }
 0x17a   :  { %v644_v8 = vmul.f32 %v1000_v4, %v643_v57  ;;  %1003 = vrsqrt.f32 %v571_v18  ;;  %vm718_vm5 = vweird.f32 %v1547_v39  ;;  %v554_v62 = vsub.f32 %v1288_v34, %v1508_v29 }
 0x17b   :  { %v665_v22 = vmul.f32 0.5, %v664_v21  ;;  %v780_v23 = vadd.f32 %v1351_v56, %v760_v19  ;;  %1005 = vrsqrt.f32 %v1547_v39 }
 0x17c   :  { %v645_v24 = vmul.f32 0.5, %v644_v8 }
 0x17d   :  { %v666_v25 = vsub.f32 1.5, %v665_v22  ;;  %796 = vst.msk [vmem:[%s1605_s5 + $0x40] sm:$0xff] %vm340_vm2, %v780_v23 }
 0x17e   :  { %v646_v27 = vsub.f32 1.5, %v645_v24 }
 0x17f   :  { %v667_v31 = vmul.f32 %v998_v63, %v666_v25  ;;  %v1002_v13 = vpop.eup %1001 }
 0x180   :  { %v647_v28 = vmul.f32 %v1000_v4, %v646_v27  ;;  %v1004_v46 = vpop.eup %1003  ;;  %v703_v43 = vmul.f32 %v1002_v13, %v569_v15  ;;  %vm709_vm13 = vweird.f32 %v1002_v13 }
 0x181   :  { %v671_v58 = vsel %vm670_vm11, %v998_v63, %v667_v31  ;;  %v1006_v42 = vpop.eup %1005  ;;  %v723_v1 = vmul.f32 %v1004_v46, %v571_v18  ;;  %vm729_vm14 = vweird.f32 %v1004_v46  ;;  %vm710_vm1 = vmor %vm708_vm15, %vm709_vm13 }
 0x182   :  { %v651_v47 = vsel %vm650_vm12, %v1000_v4, %v647_v28  ;;  %v741_v48 = vmul.f32 %v671_v58, %v549_v17  ;;  %v704_v50 = vmul.f32 %v1002_v13, %v703_v43  ;;  %v713_v53 = vmul.f32 %v1006_v42, %v1547_v39  ;;  %vm730_vm4 = vmor %vm728_vm3, %vm729_vm14 }
 0x183   :  { %v739_v38 = vmul.f32 %v651_v47, %v547_v37  ;;  %v724_v41 = vmul.f32 %v1004_v46, %v723_v1  ;;  %vm719_vm0 = vweird.f32 %v1006_v42 }
 0x184   :  { %v761_v36 = vmul.f32 %v1343_v49, %v741_v48  ;;  %v705_v5 = vmul.f32 0.5, %v704_v50  ;;  %v714_v12 = vmul.f32 %v1006_v42, %v713_v53  ;;  %vm720_vm6 = vmor %vm718_vm5, %vm719_vm0 }
 0x185   :  { %v759_v40 = vmul.f32 %v1343_v49, %v739_v38  ;;  %v725_v60 = vmul.f32 0.5, %v724_v41 }
 0x186   :  { %v781_v35 = vadd.f32 %v1351_v56, %v761_v36  ;;  %v706_v33 = vsub.f32 1.5, %v705_v5  ;;  %v715_v44 = vmul.f32 0.5, %v714_v12 }
 0x187   :  { %v779_v55 = vadd.f32 %v1351_v56, %v759_v40  ;;  %v726_v51 = vsub.f32 1.5, %v725_v60 }
 0x188   :  { %797 = vst.msk [vmem:[%s1605_s5 + $0x48] sm:$0xff] %vm340_vm2, %v781_v35  ;;  %v707_v32 = vmul.f32 %v1002_v13, %v706_v33  ;;  %v716_v52 = vsub.f32 1.5, %v715_v44 }
 0x189   :  { %795 = vst.msk [vmem:[%s1605_s5 + $0x38] sm:$0xff] %vm340_vm2, %v779_v55  ;;  %v727_v30 = vmul.f32 %v1004_v46, %v726_v51 }
 0x18a   :  { %v711_v26 = vsel %vm710_vm1, %v1002_v13, %v707_v32  ;;  %v717_v14 = vmul.f32 %v1006_v42, %v716_v52 }
 0x18b   :  { %v745_v16 = vmul.f32 %v711_v26, %v553_v59  ;;  %v731_v63 = vsel %vm730_vm4, %v1004_v46, %v727_v30 }
 0x18c   :  { %v747_v0 = vmul.f32 %v731_v63, %v555_v54  ;;  %v721_v2 = vsel %vm720_vm6, %v1006_v42, %v717_v14 }
 0x18d   :  { %v765_v11 = vmul.f32 %v1343_v49, %v745_v16  ;;  %v746_v61 = vmul.f32 %v721_v2, %v554_v62 }
 0x18e   :  { %v767_v3 = vmul.f32 %v1343_v49, %v747_v0 }
 0x18f   :  { %v785_v45 = vadd.f32 %v1351_v56, %v765_v11  ;;  %v766_v20 = vmul.f32 %v1343_v49, %v746_v61 }
 0x190   :  { %v787_v4 = vadd.f32 %v1351_v56, %v767_v3 }
 0x191   :  { %801 = vst.msk [vmem:[%s1605_s5 + $0x68] sm:$0xff] %vm340_vm2, %v785_v45  ;;  %v786_v34 = vadd.f32 %v1351_v56, %v766_v20 }
 0x192   :  { %803 = vst.msk [vmem:[%s1605_s5 + $0x78] sm:$0xff] %vm340_vm2, %v787_v4 }
 0x193   :  { %802 = vst.msk [vmem:[%s1605_s5 + $0x70] sm:$0xff] %vm340_vm2, %v786_v34 }

</bundles_post_ra>
